<compile_context>
chip_gen: v6e
topology: v6e:2x2x1
jax: 0.10.0
libtpu: 0.0.40
codegen_flags: <defaults>
</compile_context>

<pallas_src>
import functools
from typing import NamedTuple

import jax
import jax.numpy as jnp
from jax.experimental import pallas as pl
from jax.experimental.pallas import tpu as pltpu


class GaussianDistribution(NamedTuple):
    mu: jax.Array
    var: jax.Array


def _round_up(x: int, m: int) -> int:
    return ((x + m - 1) // m) * m


def _embed_kernel(ids_ref, tab_ref, mu_out_ref, var_out_ref):
    # ids_ref     : (tile_n, 1)   int32 (VMEM)
    # tab_ref     : (V, 2*D)      f32   (VMEM-resident, same block every grid step)
    # mu_out_ref  : (tile_n, D)   f32
    # var_out_ref : (tile_n, D)   f32
    ids = ids_ref[...]                                     # (tile_n, 1)
    tile_n = ids.shape[0]
    v = tab_ref.shape[0]
    d = mu_out_ref.shape[1]

    # One-hot gather: onehot[t, k] = (ids[t] == k). Out-of-range / padded ids produce an
    # all-zero row (mu=0, var=exp(0)=1); never an OOB access.
    vocab_iota = jax.lax.broadcasted_iota(jnp.int32, (tile_n, v), 1)
    onehot = (ids == vocab_iota).astype(tab_ref.dtype)     # (tile_n, V)

    # Single fused matmul against the (V, 2*D) table. Precision pinned: exact f32 gather.
    emb = jnp.dot(
        onehot,
        tab_ref[...],
        preferred_element_type=jnp.float32,
        precision=jax.lax.Precision.HIGHEST,
    )                                                      # (tile_n, 2*D)

    mu = emb[:, :d]            # lane-aligned slice when D is a multiple of 128 (free)
    logvar = emb[:, d:]

    mu_out_ref[...] = mu.astype(mu_out_ref.dtype)
    var_out_ref[...] = jnp.exp(logvar).astype(var_out_ref.dtype)


@functools.partial(jax.jit, static_argnames=("tile_n_max",))
def distribution_embedding(token_ids, mu_table, logvar_table, *, tile_n_max: int = 2048):
    B, S = token_ids.shape
    V, D = mu_table.shape
    N = B * S

    # Fuse the two tiny tables into one (V, 2*D) weight (one-time 2*V*D*4-byte copy,
    # amortized across all grid steps; both tables stay fully VMEM-resident).
    fused_table = jnp.concatenate([mu_table, logvar_table], axis=1)   # (V, 2*D)

    # Token-tile size: multiple of 8 (f32 sublane), capped at tile_n_max, and capped at
    # ~N/2 so small/medium problems still produce a grid of >= 2 steps (v7x: 2 TCs).
    half = _round_up(max(pl.cdiv(N, 2), 1), 8)
    tile_n = max(8, min(tile_n_max, half))
    grid_len = pl.cdiv(N, tile_n)

    # Pad only the (tiny) id vector to a whole number of tiles; pad id 0 is a valid row.
    # Outputs are NOT padded: the ragged last output block is masked on write by Pallas,
    # so no post-kernel slice copy is needed.
    n_ids = grid_len * tile_n
    ids_flat = token_ids.reshape(-1).astype(jnp.int32)
    ids_padded = jnp.pad(ids_flat, (0, n_ids - N)).reshape(n_ids, 1)

    grid_spec = pltpu.PrefetchScalarGridSpec(
        num_scalar_prefetch=0,
        grid=(grid_len,),
        in_specs=[
            pl.BlockSpec((tile_n, 1), lambda i: (i, 0)),     # token-id tile
            pl.BlockSpec((V, 2 * D), lambda i: (0, 0)),      # fused table, VMEM-resident
        ],
        out_specs=[
            pl.BlockSpec((tile_n, D), lambda i: (i, 0)),     # mu out (lane-dense)
            pl.BlockSpec((tile_n, D), lambda i: (i, 0)),     # var out (lane-dense)
        ],
    )

    cost = pl.CostEstimate(
        flops=2 * n_ids * V * (2 * D),                       # one fused one-hot matmul
        transcendentals=n_ids * D,                           # exp
        bytes_accessed=(n_ids * 4                            # ids read
                        + V * 2 * D * 4                      # fused table read once
                        + 2 * N * D * 4),                    # mu/var written
    )

    mu_out, var_out = pl.pallas_call(
        _embed_kernel,
        out_shape=(
            jax.ShapeDtypeStruct((N, D), mu_table.dtype),
            jax.ShapeDtypeStruct((N, D), mu_table.dtype),
        ),
        grid_spec=grid_spec,
        compiler_params=pltpu.CompilerParams(
            dimension_semantics=("parallel",),               # token tiles are independent
        ),
        cost_estimate=cost,
    )(ids_padded, fused_table)

    return GaussianDistribution(
        mu=mu_out.reshape(B, S, D),
        var=var_out.reshape(B, S, D),
    )


if __name__ == "__main__":
    # Small, deterministic setup (matches nn.Embedding(vocab_size, d_model) x2).
    vocab_size = 64
    d_model = 128
    batch, seq = 2, 8

    key = jax.random.PRNGKey(0)
    k_mu, k_lv, k_ids = jax.random.split(key, 3)

    mu_table = jax.random.normal(k_mu, (vocab_size, d_model), dtype=jnp.float32)
    logvar_table = 0.1 * jax.random.normal(k_lv, (vocab_size, d_model), dtype=jnp.float32)
    token_ids = jax.random.randint(k_ids, (batch, seq), 0, vocab_size, dtype=jnp.int32)

    dist = distribution_embedding(token_ids, mu_table, logvar_table)
    jax.block_until_ready(dist.mu)
    jax.block_until_ready(dist.var)

    # Pure-JAX reference check (embedding gather + exp).
    mu_ref = jnp.take(mu_table, token_ids, axis=0)
    var_ref = jnp.exp(jnp.take(logvar_table, token_ids, axis=0))
    assert dist.mu.shape == (batch, seq, d_model)
    assert dist.var.shape == (batch, seq, d_model)
    assert jnp.allclose(dist.mu, mu_ref, atol=1e-5)
    assert jnp.allclose(dist.var, var_ref, atol=1e-5)

    print("KERNEL_OK")
</pallas_src>

<mosaic_0001>
module attributes {stable_mosaic.version = 11 : i64} {
  func.func @_embed_kernel(%arg0: i32, %arg1: memref<8x1xi32, #tpu.memory_space<vmem>>, %arg2: memref<64x256xf32, #tpu.memory_space<vmem>>, %arg3: memref<8x128xf32, #tpu.memory_space<vmem>>, %arg4: memref<8x128xf32, #tpu.memory_space<vmem>>) attributes {dimension_semantics = [#tpu.dimension_semantics<parallel>], iteration_bounds = array<i64: 2>, scalar_prefetch = 0 : i64, scratch_operands = 0 : i64, tpu.core_type = #tpu.core_type<tc>, window_params = [{transform_indices = @transform_0, window_bounds = array<i64: 8, 1>}, {pipeline_mode = #tpu.pipeline_mode<synchronous>, transform_indices = @transform_1, window_bounds = array<i64: 64, 256>}, {transform_indices = @transform_2, window_bounds = array<i64: 8, 128>}, {transform_indices = @transform_3, window_bounds = array<i64: 8, 128>}]} {
    %c0 = arith.constant 0 : index
    %c0_0 = arith.constant 0 : index
    %0 = vector.load %arg1[%c0, %c0_0] : memref<8x1xi32, #tpu.memory_space<vmem>>, vector<8x1xi32>
    %1 = tpu.iota {dimensions = array<i32: 1>} : vector<8x64xi32>
    %2 = vector.broadcast %0 : vector<8x1xi32> to vector<8x64xi32>
    %3 = arith.cmpi eq, %2, %1 : vector<8x64xi32>
    %4 = arith.extui %3 : vector<8x64xi1> to vector<8x64xi32>
    %5 = arith.sitofp %4 : vector<8x64xi32> to vector<8x64xf32>
    %c0_1 = arith.constant 0 : index
    %c0_2 = arith.constant 0 : index
    %6 = vector.load %arg2[%c0_1, %c0_2] : memref<64x256xf32, #tpu.memory_space<vmem>>, vector<64x256xf32>
    %cst = arith.constant dense<0.000000e+00> : vector<8x256xf32>
    %7 = tpu.matmul %5, %6, %cst {dimension_numbers = #tpu.dot_dimension_numbers<[1], [0], [0], [1], [0, 0, 1, 1], [], []>, precision = #tpu.contract_precision<fp32>} : vector<8x64xf32>, vector<64x256xf32>, vector<8x256xf32> -> vector<8x256xf32>
    %8 = vector.extract_strided_slice %7 {offsets = [0, 0], sizes = [8, 128], strides = [1, 1]} : vector<8x256xf32> to vector<8x128xf32>
    %9 = vector.extract_strided_slice %7 {offsets = [0, 128], sizes = [8, 128], strides = [1, 1]} : vector<8x256xf32> to vector<8x128xf32>
    %c0_3 = arith.constant 0 : index
    %c0_4 = arith.constant 0 : index
    %10 = vector.load %arg3[%c0_3, %c0_4] : memref<8x128xf32, #tpu.memory_space<vmem>>, vector<8x128xf32>
    tpu.vector_store %arg3[%c0_3, %c0_4], %8 {strides = array<i32>} : memref<8x128xf32, #tpu.memory_space<vmem>>, vector<8x128xf32>,
    %11 = math.exp %9 : vector<8x128xf32>
    %c0_5 = arith.constant 0 : index
    %c0_6 = arith.constant 0 : index
    %12 = vector.load %arg4[%c0_5, %c0_6] : memref<8x128xf32, #tpu.memory_space<vmem>>, vector<8x128xf32>
    tpu.vector_store %arg4[%c0_5, %c0_6], %11 {strides = array<i32>} : memref<8x128xf32, #tpu.memory_space<vmem>>, vector<8x128xf32>,
    return
  }
  func.func @transform_0(%arg0: i32) -> (i32, i32) {
    %c0_i32 = arith.constant 0 : i32
    %c0_i32_0 = arith.constant 0 : i32
    return %arg0, %c0_i32 : i32, i32
  }
  func.func @transform_1(%arg0: i32) -> (i32, i32) {
    %c0_i32 = arith.constant 0 : i32
    %c0_i32_0 = arith.constant 0 : i32
    %c0_i32_1 = arith.constant 0 : i32
    return %c0_i32, %c0_i32_0 : i32, i32
  }
  func.func @transform_2(%arg0: i32) -> (i32, i32) {
    %c0_i32 = arith.constant 0 : i32
    %c0_i32_0 = arith.constant 0 : i32
    return %arg0, %c0_i32 : i32, i32
  }
  func.func @transform_3(%arg0: i32) -> (i32, i32) {
    %c0_i32 = arith.constant 0 : i32
    %c0_i32_0 = arith.constant 0 : i32
    return %arg0, %c0_i32 : i32, i32
  }
}

</mosaic_0001>

<bundles_post_ra>
// kernel: distribution_embedding.1
= control target key start
LH: loop header
LB: loop body
LE: loop exit
PB: predicated region body
PF: predicated region fallthrough
CT: control target
= control target key end

     0   :  { %9 = vsyncpa [#allocation3], 0  ;;  %s1602_s0 = inlined_call_operand.vmem [shape: s32[16,1], index: 0, kind: input, shape index: {}]   ;;  %s1603_s1 = inlined_call_operand.vmem [shape: f32[64,256], index: 1, kind: input, shape index: {}]   ;;  %s1604_s2 = inlined_call_operand.hbm [shape: f32[16,128], index: 2, kind: output, shape index: {0}]   ;;  %s1605_s3 = inlined_call_operand.hbm [shape: f32[16,128], index: 3, kind: output, shape index: {1}]  }
   0x1   :  { %11 = vsyncpa [#allocation3 + $0x1], 0 }
   0x2   :  { %12 = vsyncpa [#allocation5], 0 }
   0x3   :  { %14 = vsyncpa [#allocation5 + $0x1], 0  ;;  %s1162_s12 = smov 0   ;;  %s1164_s13 = smov 0  }
   0x4   :  { %s1166_s14 = smov 0   ;;  %s1168_s15 = smov 0  }
   0x5 LB: > { %s1183_s16 = sadd.s32 4294967295, %s1136_s15   ;;  %s980_s17 = sadd.s32 4294967294, %s1136_s15   ;;  %s1136_s15 = sphi %s1168_s15, %s1611_s15   ;;  %s1132_s14 = sphi %s1166_s14, %s1610_s14   ;;  %s1128_s13 = sphi %s1164_s13, %s1609_s13   ;;  %s1124_s12 = sphi %s1162_s12, %s1608_s12  }
   0x6   : > { %s1187_s18 = sadd.s32 1, %s1136_s15   ;;  %s74_s19 = sadd.s32 1, %s1132_s14 }
   0x7   : > { %s71_s20 = ssub.s32 %s1136_s15, %s1187_s18  ;;  %p84_p0 = scmp.ne.s32.totalorder %s1132_s14, %s1128_s13 }
   0x8   : > { %p72_p1 = scmp.eq.s32.totalorder %s71_s20, 0  ;;  %p85_p2 = scmp.eq.s32.totalorder %s1183_s16, 1 }
   0x9   : > { %p90_p3 = scmp.ne.s32.totalorder %s1128_s13, %s1124_s12  ;;  %p91_p4 = scmp.eq.s32.totalorder %s980_s17, 1 }
   0xa   : > { %s1198_s21 = scalar_select %p72_p1, %s1132_s14, %s74_s19  }
   0xb   : > { %p1200_p5 = por %p85_p2, %p84_p0  ;;  %p1204_p6 = por %p91_p4, %p90_p3 }
   0xc   : > { %p983_p7 = scmp.ge.s32.totalorder %s1136_s15, 1  ;;  %p145_p8 = scmp.lt.s32.totalorder %s1136_s15, 3 }
   0xe   : > { %p146_p9 = pnand %p983_p7, %p145_p8 }
   0xf   : > { %p173_p10 = scmp.lt.s32.totalorder (!%p146_p9), %s1183_s16, 1  ;;  %s1523_s25 = sand.u32 (!%p146_p9), 1, %s1128_s13  }
  0x10   : > { %149 = sbr.rel (%p146_p9) target bundleno = 433 (0x1b1), region = 28  ;;  %s993_s27 = sshll.u32 (!%p146_p9), %s1183_s16, 7 }
  0x11   : > { %s1534_s5 = scalar_lea.hbm (!%p146_p9), %s1604_s2, %s993_s27  ;;  %s858_s6 = scalar_lea.sflag (!%p146_p9), [#allocation3], %s1523_s25 }
  0x12   : > { %s1140_s8 = smov (!%p146_p9), [#allocation2]  }
  0x15   : > { %v201_v0 = vld [vmem:[%s1603_s1 + $0x78] sm:$0xff]  ;;  %v200_v1 = vld [vmem:[%s1603_s1 + $0x70] sm:$0xff]  ;;  %v199_v2 = vld [vmem:[%s1603_s1 + $0x68] sm:$0xff]  ;;  %v1138_v3 = vmov 0   ;;  %v1139_v10 = vmov 0.0   ;;  %s174_s9 = scalar_select %p173_p10, %s1183_s16, 1 }
  0x16   : > { %1043 = vset.pattern.permute.xlu0 %v1138_v3  ;;  %v1220_v4 = vand.u32 4294901760, %v201_v0  ;;  %v1222_v5 = vand.u32 4294901760, %v200_v1  ;;  %v1224_v6 = vand.u32 4294901760, %v199_v2  ;;  %v198_v7 = vld [vmem:[%s1603_s1 + $0x60] sm:$0xff]  ;;  %v197_v8 = vld [vmem:[%s1603_s1 + $0x58] sm:$0xff]  ;;  %v196_v9 = vld [vmem:[%s1603_s1 + $0x50] sm:$0xff]  ;;  %442 = vmatprep.mubr.f32.mxu1 %v1139_v10 }
  0x17   : > { %v1239_v11 = vand.u32 4294901760, %v198_v7  ;;  %v1241_v12 = vand.u32 4294901760, %v197_v8  ;;  %v1243_v13 = vand.u32 4294901760, %v196_v9  ;;  %v195_v14 = vld [vmem:[%s1603_s1 + $0x48] sm:$0xff]  ;;  %v194_v15 = vld [vmem:[%s1603_s1 + $0x40] sm:$0xff]  ;;  %286 = vmatprep.mubr.f32.mxu0 %v1139_v10  ;;  %s986_s20 = sshll.u32 %s174_s9, 3 }
  0x18   : > { %v1253_v16 = vsub.f32 %v201_v0, %v1220_v4  ;;  %v1256_v17 = vsub.f32 %v200_v1, %v1222_v5  ;;  %v1259_v18 = vsub.f32 %v199_v2, %v1224_v6  ;;  %v1261_v19 = vand.u32 4294901760, %v195_v14  ;;  %223 = vmatprep.subr.mxu0 %v1220_v4  ;;  %s176_s26 = scalar_lea.vmem %s1602_s0, %s986_s20  ;;  %v193_v41 = vld [vmem:[%s1603_s1 + $0x38] sm:$0xff]  ;;  %v192_v42 = vld [vmem:[%s1603_s1 + $0x30] sm:$0xff]  ;;  %v191_v43 = vld [vmem:[%s1603_s1 + $0x28] sm:$0xff]  ;;  %s1050_s9 = sshll.u32 %s1140_s8, 4  ;;  %s1051_s9 = int_to_ptr.vmem [resolvable:$false] %s1050_s9 }
  0x19   : > { %v1265_v20 = vsub.f32 %v198_v7, %v1239_v11  ;;  %v1268_v21 = vsub.f32 %v197_v8, %v1241_v12  ;;  %v1271_v22 = vsub.f32 %v196_v9, %v1243_v13  ;;  %v1273_v23 = vand.u32 4294901760, %v194_v15  ;;  %225 = vmatpush1.msra.mxu0 %v1222_v5  ;;  %v177_v28 = vld [vmem:[%s176_s26] sm:$0xff]  ;;  %v189_v49 = vld [vmem:[%s1603_s1 + $0x18] sm:$0xff]  ;;  %v188_v50 = vld [vmem:[%s1603_s1 + $0x10] sm:$0xff]  ;;  %s984_s26 = sshll.u32 %s1523_s25, 3  ;;  %s1052_s10 = scalar_lea.vmem %s1051_s9, 256 }
  0x1a   : > { %v316_v24 = vand.u32 4294901760, %v1253_v16  ;;  %v322_v25 = vand.u32 4294901760, %v1256_v17  ;;  %v328_v26 = vand.u32 4294901760, %v1259_v18  ;;  %v1283_v27 = vsub.f32 %v195_v14, %v1261_v19  ;;  %227 = vmatprep.subr.mxu0 %v1224_v6  ;;  %181 = vperm.xlu0 %1043, %v177_v28   ;;  %v190_v48 = vld [vmem:[%s1603_s1 + $0x20] sm:$0xff]  ;;  %v187_v54 = vld [vmem:[%s1603_s1 + $0x8] sm:$0xff]  ;;  %s165_s28 = scalar_lea.vmem [#allocation2], %s984_s26 }
  0x1b   : > { %v334_v29 = vand.u32 4294901760, %v1265_v20  ;;  %v340_v30 = vand.u32 4294901760, %v1268_v21  ;;  %v346_v31 = vand.u32 4294901760, %v1271_v22  ;;  %v1290_v32 = vsub.f32 %v194_v15, %v1273_v23  ;;  %229 = vmatpush1.msra.mxu0 %v1239_v11  ;;  %v186_v3 = vld [vmem:[%s1603_s1] sm:$0xff]  ;;  %s876_s29 = sshll.u32 %s165_s28, 4  ;;  %s1536_s29 = int_to_ptr.vmem [resolvable:$true] %s876_s29 }
  0x1c   : > { %v317_v33 = vsub.f32 %v1253_v16, %v316_v24  ;;  %v323_v34 = vsub.f32 %v1256_v17, %v322_v25  ;;  %v329_v35 = vsub.f32 %v1259_v18, %v328_v26  ;;  %v352_v36 = vand.u32 4294901760, %v1283_v27  ;;  %231 = vmatprep.subr.mxu0 %v1241_v12  ;;  %s1046_s7 = scalar_lea.vmem %s1536_s29, 128  ;;  %p1053_p0 = scmp.lt.s32.totalorder %s1536_s29, %s1051_s9 }
  0x1d   : > { %v335_v37 = vsub.f32 %v1265_v20, %v334_v29  ;;  %v341_v38 = vsub.f32 %v1268_v21, %v340_v30  ;;  %v347_v39 = vsub.f32 %v1271_v22, %v346_v31  ;;  %v358_v40 = vand.u32 4294901760, %v1290_v32  ;;  %233 = vmatpush1.msra.mxu0 %v1243_v13  ;;  %p1047_p11 = scmp.ne.s32.totalorder %s1536_s29, %s1046_s7  ;;  %p1054_p1 = scmp.lt.s32.totalorder %s1052_s10, %s1046_s7 }
  0x1e   : > { %v318_v44 = vand.u32 4294901760, %v317_v33  ;;  %v324_v45 = vand.u32 4294901760, %v323_v34  ;;  %v330_v46 = vand.u32 4294901760, %v329_v35  ;;  %v353_v47 = vsub.f32 %v1283_v27, %v352_v36  ;;  %235 = vmatprep.subr.mxu0 %v1261_v19 }
  0x1f   : > { %v336_v51 = vand.u32 4294901760, %v335_v37  ;;  %v342_v52 = vand.u32 4294901760, %v341_v38  ;;  %v359_v53 = vsub.f32 %v1290_v32, %v358_v40  ;;  %237 = vmatpush1.msra.mxu0 %v1273_v23  ;;  %v348_v55 = vand.u32 4294901760, %v347_v39  ;;  %p1048_p12 = pnand %p1047_p11, %p1200_p5  ;;  %p1055_p2 = por %p1054_p1, %p1053_p0 }
  0x20   : > { %319 = vmatprep.subr.mxu1 %v318_v44  ;;  %v1344_v56 = vand.u32 4294901760, %v193_v41  ;;  %v1346_v57 = vand.u32 4294901760, %v192_v42  ;;  %v1348_v58 = vand.u32 4294901760, %v191_v43  ;;  %v354_v59 = vand.u32 4294901760, %v353_v47 }
  0x21   : > { %325 = vmatpush1.msra.mxu1 %v324_v45  ;;  %v1350_v60 = vand.u32 4294901760, %v190_v48  ;;  %v1352_v61 = vand.u32 4294901760, %v189_v49  ;;  %v1354_v62 = vand.u32 4294901760, %v188_v50  ;;  %v1365_v2 = vand.u32 4294901760, %v187_v54  ;;  %p1049_p13 = pneg %p1048_p12 }
  0x22   : > { %331 = vmatprep.subr.mxu1 %v330_v46  ;;  %v1357_v63 = vsub.f32 %v193_v41, %v1344_v56  ;;  %v1360_v0 = vsub.f32 %v192_v42, %v1346_v57  ;;  %v1363_v1 = vsub.f32 %v191_v43, %v1348_v58  ;;  %239 = vmatprep.subr.mxu0 %v1344_v56  ;;  %v360_v7 = vand.u32 4294901760, %v359_v53 }
  0x23   : > { %337 = vmatpush1.msra.mxu1 %v336_v51  ;;  %v1372_v8 = vsub.f32 %v190_v48, %v1350_v60  ;;  %v1375_v9 = vsub.f32 %v189_v49, %v1352_v61  ;;  %v1378_v14 = vsub.f32 %v188_v50, %v1354_v62  ;;  %241 = vmatpush1.msra.mxu0 %v1346_v57  ;;  %v1391_v39 = vand.u32 4294901760, %v186_v3  ;;  %p1056_p3 = pnand %p1055_p2, %p1049_p13 }
  0x24   : > { %343 = vmatprep.subr.mxu1 %v342_v52  ;;  %v364_v15 = vand.u32 4294901760, %v1357_v63  ;;  %v370_v28 = vand.u32 4294901760, %v1360_v0  ;;  %v376_v33 = vand.u32 4294901760, %v1363_v1  ;;  %v1385_v34 = vsub.f32 %v187_v54, %v1365_v2  ;;  %243 = vmatprep.subr.mxu0 %v1348_v58 }
  0x25   : > { %349 = vmatpush1.msra.mxu1 %v348_v55  ;;  %v382_v35 = vand.u32 4294901760, %v1372_v8  ;;  %v388_v37 = vand.u32 4294901760, %v1375_v9  ;;  %v394_v38 = vand.u32 4294901760, %v1378_v14  ;;  %245 = vmatpush1.msra.mxu0 %v1350_v60  ;;  %v1415_v48 = vsub.f32 %v186_v3, %v1391_v39 }
  0x26   : > { %355 = vmatprep.subr.mxu1 %v354_v59  ;;  %v365_v41 = vsub.f32 %v1357_v63, %v364_v15  ;;  %v371_v42 = vsub.f32 %v1360_v0, %v370_v28  ;;  %v377_v43 = vsub.f32 %v1363_v1, %v376_v33  ;;  %v400_v44 = vand.u32 4294901760, %v1385_v34  ;;  %247 = vmatprep.subr.mxu0 %v1352_v61 }
  0x27   : > { %361 = vmatpush1.msra.mxu1 %v360_v7  ;;  %v383_v45 = vsub.f32 %v1372_v8, %v382_v35  ;;  %v389_v46 = vsub.f32 %v1375_v9, %v388_v37  ;;  %v395_v47 = vsub.f32 %v1378_v14, %v394_v38  ;;  %249 = vmatpush1.msra.mxu0 %v1354_v62  ;;  %v406_v54 = vand.u32 4294901760, %v1415_v48 }
  0x28   : > { %v366_v49 = vand.u32 4294901760, %v365_v41  ;;  %v372_v50 = vand.u32 4294901760, %v371_v42  ;;  %v378_v51 = vand.u32 4294901760, %v377_v43  ;;  %v401_v52 = vsub.f32 %v1385_v34, %v400_v44  ;;  %251 = vmatprep.subr.mxu0 %v1365_v2 }
  0x29   : > { %v384_v53 = vand.u32 4294901760, %v383_v45  ;;  %v390_v55 = vand.u32 4294901760, %v389_v46  ;;  %253 = vmatpush1.msra.mxu0 %v1391_v39  ;;  %v396_v59 = vand.u32 4294901760, %v395_v47  ;;  %v407_v3 = vsub.f32 %v1415_v48, %v406_v54 }
  0x2a   : > { %367 = vmatprep.subr.mxu1 %v366_v49  ;;  %468 = vmatprep.subr.mxu0 %v1253_v16  ;;  %v402_v7 = vand.u32 4294901760, %v401_v52  ;;  %v178_v42 = vlaneseq  ;;  %vm202_vm0 = vcmask 523264  }
  0x2b   : > { %373 = vmatpush1.msra.mxu1 %v372_v50  ;;  %v408_v41 = vand.u32 4294901760, %v407_v3 }
  0x2c   : > { %379 = vmatprep.subr.mxu1 %v378_v51  ;;  %v179_v43 = vand.u32 127, %v178_v42 }
  0x2d   : > { %385 = vmatpush1.msra.mxu1 %v384_v53 }
  0x2e   : > { %391 = vmatprep.subr.mxu1 %v390_v55 }
  0x2f   : > { %397 = vmatpush1.msra.mxu1 %v396_v59 }
  0x30   : > { %403 = vmatprep.subr.mxu1 %v402_v7 }
  0x31   : > { %409 = vmatpush1.msra.mxu1 %v408_v41 }
  0x32   : > { %572 = vmatprep.subr.mxu1 %v1220_v4 }
  0x95   : > { %v182_v45 = vpop.permute.xlu0 %181 }
  0x96   : > { %vm183_vm1 = vcmp.eq.s32.totalorder %v182_v45, %v179_v43 }
  0x97   : > { %v1430_v46 = vsel %vm183_vm1, 1.0, %v1139_v10 }
  0x98   : > { %v204_v47 = vsel %vm202_vm0, %v1430_v46, 0  ;;  %988 = vmatmul.mubr.msk.f32.vlgmr.msra.gmra.mxu1 %vm202_vm0, %v1430_v46 }
  0x99   : > { %v288_v49 = vsub.f32 %v204_v47, %v204_v47  ;;  %574 = vmatpush1.msra.mxu1 %v1222_v5  ;;  %635 = vmatprep.mubr.f32.mxu1 %v1139_v10 }
  0x9a   : > { %576 = vmatprep.subr.mxu1 %v1224_v6 }
  0x9b   : > { %578 = vmatpush1.msra.mxu1 %v1239_v11  ;;  %v289_v50 = vand.u32 4294901760, %v288_v49 }
  0x9c   : > { %580 = vmatprep.subr.mxu1 %v1241_v12 }
  0x9d   : > { %582 = vmatpush1.msra.mxu1 %v1243_v13  ;;  %v290_v51 = vsub.f32 %v288_v49, %v289_v50 }
  0x9e   : > { %584 = vmatprep.subr.mxu1 %v1261_v19 }
  0x9f   : > { %586 = vmatpush1.msra.mxu1 %v1273_v23  ;;  %v291_v52 = vand.u32 4294901760, %v290_v51 }
  0xa0   : > { %588 = vmatprep.subr.mxu1 %v1344_v56 }
  0xa1   : > { %590 = vmatpush1.msra.mxu1 %v1346_v57  ;;  %292 = vmatmul.mubr.f32.vlgmr.msra.gmra.mxu0 %v291_v52 }
  0xa2   : > { %471 = vmatpush1.msra.mxu0 %v1256_v17  ;;  %592 = vmatprep.subr.mxu1 %v1348_v58 }
  0xa3   : > { %474 = vmatprep.subr.mxu0 %v1259_v18  ;;  %594 = vmatpush1.msra.mxu1 %v1350_v60 }
  0xa4   : > { %477 = vmatpush1.msra.mxu0 %v1265_v20  ;;  %596 = vmatprep.subr.mxu1 %v1352_v61 }
  0xa5   : > { %480 = vmatprep.subr.mxu0 %v1268_v21  ;;  %598 = vmatpush1.msra.mxu1 %v1354_v62 }
  0xa6   : > { %483 = vmatpush1.msra.mxu0 %v1271_v22  ;;  %600 = vmatprep.subr.mxu1 %v1365_v2 }
  0xa7   : > { %486 = vmatprep.subr.mxu0 %v1283_v27  ;;  %602 = vmatpush1.msra.mxu1 %v1391_v39 }
  0xa8   : > { %489 = vmatpush1.msra.mxu0 %v1290_v32  ;;  %639 = vmatmul.mubr.f32.vlgmr.msra.gmra.mxu1 %v289_v50 }
  0xa9   : > { %782 = vmatprep.subr.mxu1 %v1220_v4  ;;  %492 = vmatprep.subr.mxu0 %v1357_v63 }
  0xaa   : > { %784 = vmatpush1.msra.mxu1 %v1222_v5  ;;  %495 = vmatpush1.msra.mxu0 %v1360_v0 }
  0xab   : > { %786 = vmatprep.subr.mxu1 %v1224_v6  ;;  %498 = vmatprep.subr.mxu0 %v1363_v1 }
  0xac   : > { %788 = vmatpush1.msra.mxu1 %v1239_v11  ;;  %501 = vmatpush1.msra.mxu0 %v1372_v8 }
  0xad   : > { %790 = vmatprep.subr.mxu1 %v1241_v12  ;;  %504 = vmatprep.subr.mxu0 %v1375_v9 }
  0xae   : > { %792 = vmatpush1.msra.mxu1 %v1243_v13  ;;  %507 = vmatpush1.msra.mxu0 %v1378_v14 }
  0xaf   : > { %794 = vmatprep.subr.mxu1 %v1261_v19  ;;  %510 = vmatprep.subr.mxu0 %v1385_v34 }
  0xb0   : > { %796 = vmatpush1.msra.mxu1 %v1273_v23  ;;  %513 = vmatpush1.msra.mxu0 %v1415_v48 }
  0xb1   : > { %546 = vmatprep.mubr.f32.mxu0 %v1139_v10  ;;  %798 = vmatprep.subr.mxu1 %v1344_v56 }
  0xb2   : > { %549 = vmatmul.mubr.f32.vlgmr.msra.gmra.mxu0 %v288_v49  ;;  %664 = vmatprep.subr.mxu0 %v316_v24 }
  0xb3   : > { %800 = vmatpush1.msra.mxu1 %v1346_v57  ;;  %668 = vmatpush1.msra.mxu0 %v322_v25 }
  0xb4   : > { %802 = vmatprep.subr.mxu1 %v1348_v58  ;;  %672 = vmatprep.subr.mxu0 %v328_v26 }
  0xb5   : > { %804 = vmatpush1.msra.mxu1 %v1350_v60  ;;  %676 = vmatpush1.msra.mxu0 %v334_v29 }
  0xb6   : > { %806 = vmatprep.subr.mxu1 %v1352_v61  ;;  %680 = vmatprep.subr.mxu0 %v340_v30 }
  0xb7   : > { %808 = vmatpush1.msra.mxu1 %v1354_v62  ;;  %684 = vmatpush1.msra.mxu0 %v346_v31 }
  0xb8   : > { %810 = vmatprep.subr.mxu1 %v1365_v2  ;;  %688 = vmatprep.subr.mxu0 %v352_v36 }
  0xb9   : > { %812 = vmatpush1.msra.mxu1 %v1391_v39  ;;  %845 = vmatprep.mubr.f32.mxu1 %v1139_v10 }
  0xba   : > { %692 = vmatpush1.msra.mxu0 %v358_v40  ;;  %990 = vmatmul.mubr.msk.f32.vlgmr.msra.gmra.mxu1 %vm202_vm0, %v1430_v46 }
  0xbb   : > { %696 = vmatprep.subr.mxu0 %v364_v15  ;;  %757 = vmatprep.mubr.f32.mxu0 %v1139_v10 }
  0xbc   : > { %700 = vmatpush1.msra.mxu0 %v370_v28 }
  0xbd   : > { %704 = vmatprep.subr.mxu0 %v376_v33 }
  0xbe   : > { %708 = vmatpush1.msra.mxu0 %v382_v35 }
  0xbf   : > { %712 = vmatprep.subr.mxu0 %v388_v37 }
  0xc0   : > { %716 = vmatpush1.msra.mxu0 %v394_v38 }
  0xc1   : > { %720 = vmatprep.subr.mxu0 %v400_v44 }
  0xc2   : > { %724 = vmatpush1.msra.mxu0 %v406_v54 }
  0xc3   : > { %989 = vmatmul.mubr.msk.f32.vlgmr.msra.gmra.mxu0 %vm202_vm0, %v1430_v46 }
 0x158   : > { %v445_v5 = vpop.f32.mrf.mxu1 }
 0x15a   : > { %v447_v11 = vpop.f32.mrf.mxu1 }
 0x161   : > { %v293_v4 = vpop.f32.mrf.mxu0 }
 0x162   : > { %v446_v12 = vadd.f32 %v445_v5, %v293_v4 }
 0x163   : > { %v295_v6 = vpop.f32.mrf.mxu0 }
 0x164   : > { %v448_v17 = vadd.f32 %v447_v11, %v295_v6 }
 0x168   : > { %v640_v13 = vpop.f32.mrf.mxu1 }
 0x16a   : > { %v642_v20 = vpop.f32.mrf.mxu1 }
 0x172   : > { %v550_v10 = vpop.f32.mrf.mxu0 }
 0x173   : > { %v551_v18 = vadd.f32 %v550_v10, %v446_v12 }
 0x174   : > { %v552_v16 = vpop.f32.mrf.mxu0 }
 0x175   : > { %v553_v19 = vadd.f32 %v552_v16, %v448_v17  ;;  %v641_v21 = vadd.f32 %v640_v13, %v551_v18 }
 0x177   : > { %v643_v25 = vadd.f32 %v642_v20, %v553_v19 }
 0x17a   : > { %v848_v22 = vpop.f32.mrf.mxu1 }
 0x17c   : > { %v850_v30 = vpop.f32.mrf.mxu1 }
 0x183   : > { %v760_v23 = vpop.f32.mrf.mxu0 }
 0x184   : > { %v761_v24 = vadd.f32 %v760_v23, %v641_v21 }
 0x185   : > { %v762_v26 = vpop.f32.mrf.mxu0 }
 0x186   : > { %v849_v27 = vadd.f32 %v848_v22, %v761_v24  ;;  %v763_v29 = vadd.f32 %v762_v26, %v643_v25 }
 0x188   : > { %v851_v31 = vadd.f32 %v850_v30, %v763_v29  ;;  %853 = vst [vmem:[%s165_s28] sm:$0xff] %v849_v27 }
 0x189   : > { %1059 = shalt.err (!%p1056_p3)
}
 0x18a   : > { %s1060_s11 = scalar_lea.hbm %s1534_s5, 128  ;;  %s1064_s20 = scalar_lea.hbm %s1604_s2, 256 }
 0x18b   : > { %p1061_p4 = scmp.ne.s32.totalorder %s1534_s5, %s1060_s11  ;;  %p1065_p9 = scmp.lt.s32.totalorder %s1534_s5, %s1604_s2 }
 0x18c   : > { %p1066_p10 = scmp.lt.s32.totalorder %s1064_s20, %s1060_s11 }
 0x18d   : > { %p1062_p7 = pnand %p1061_p4, %p1200_p5 }
 0x18e   : > { %p1067_p11 = por %p1066_p10, %p1065_p9 }
 0x18f   : > { %p1063_p8 = pneg %p1062_p7 }
 0x191   : > { %p1068_p12 = pnand %p1067_p11, %p1063_p8 }
 0x193   : > { %1071 = shalt.err (!%p1068_p12)
}
 0x194   : > { %997 = dma.vmem_to_hbm [thread:$0]  (%p1200_p5), %s1536_s29, 128, %s1534_s5, %s858_s6   ;;  %v854_v32 = vmul.f32 1.442695, %v851_v31 }
 0x195   : > { %s172_s30 = scalar_lea.vmem [#allocation4], %s984_s26  ;;  %s1566_s9 = scalar_lea.hbm %s1605_s3, %s993_s27 }
 0x196   : > { %1044 = vpow2.f32 %v854_v32  ;;  %s889_s4 = sshll.u32 %s172_s30, 4  ;;  %s863_s10 = scalar_lea.sflag [#allocation5], %s1523_s25  ;;  %s890_s4 = int_to_ptr.vmem [resolvable:$true] %s889_s4 }
 0x197   : > { %s1072_s11 = scalar_lea.vmem %s890_s4, 128  ;;  %s1141_s29 = smov [#allocation4]  }
 0x198   : > { %p1073_p13 = scmp.ne.s32.totalorder %s890_s4, %s1072_s11  ;;  %s1076_s5 = sshll.u32 %s1141_s29, 4  ;;  %s1077_s5 = int_to_ptr.vmem [resolvable:$false] %s1076_s5 }
 0x199   : > { %s1078_s26 = scalar_lea.vmem %s1077_s5, 256  ;;  %p1079_p2 = scmp.lt.s32.totalorder %s890_s4, %s1077_s5 }
 0x19a   : > { %p1074_p0 = pnand %p1073_p13, %p1200_p5  ;;  %p1080_p3 = scmp.lt.s32.totalorder %s1078_s26, %s1072_s11 }
 0x19c   : > { %p1075_p1 = pneg %p1074_p0  ;;  %p1081_p4 = por %p1080_p3, %p1079_p2 }
 0x19e   : > { %p1082_p7 = pnand %p1081_p4, %p1075_p1 }
 0x1a3   : > { %v1045_v36 = vpop.eup %1044 }
 0x1a4   : > { %856 = vst [vmem:[%s172_s30] sm:$0xff] %v1045_v36 }
 0x1a5   : > { %1085 = shalt.err (!%p1082_p7)
}
 0x1a6   : > { %s1086_s16 = scalar_lea.hbm %s1566_s9, 128  ;;  %s1090_s6 = scalar_lea.hbm %s1605_s3, 256 }
 0x1a7   : > { %p1087_p8 = scmp.ne.s32.totalorder %s1566_s9, %s1086_s16  ;;  %p1091_p11 = scmp.lt.s32.totalorder %s1566_s9, %s1605_s3 }
 0x1a8   : > { %p1092_p12 = scmp.lt.s32.totalorder %s1090_s6, %s1086_s16 }
 0x1a9   : > { %p1088_p9 = pnand %p1087_p8, %p1200_p5 }
 0x1aa   : > { %p1093_p13 = por %p1092_p12, %p1091_p11 }
 0x1ab   : > { %p1089_p10 = pneg %p1088_p9 }
 0x1ad   : > { %p1094_p0 = pnand %p1093_p13, %p1089_p10 }
 0x1af   : > { %1097 = shalt.err (!%p1094_p0)
}
 0x1b0   : > { %998 = dma.vmem_to_hbm [thread:$0]  (%p1200_p5), %s890_s4, 128, %s1566_s9, %s863_s10  }
 0x1b1 PF: > { %p1008_p1 = scmp.ge.s32.totalorder %s1136_s15, 2  ;;  %s901_s20 = sand.u32 1, %s1124_s12  }
 0x1b2   : > { %s902_s24 = scalar_lea.sflag [#allocation3], %s901_s20 }
 0x1b3   : > { %p1002_p2 = pnand %p1008_p1, %p1204_p6 }
 0x1b5   : > { %p1003_p3 = pneg %p1002_p2 }
 0x1b7   : > { %1115 = dma.done.wait (%p1003_p3), %s902_s24, 128  }
 0x1b8   : > { %1117 = vsyncadd (%p1003_p3), %s902_s24, 4294967168  ;;  %s911_s28 = scalar_lea.sflag [#allocation5], %s901_s20 }
 0x1b9   : > { %1119 = dma.done.wait (%p1003_p3), %s911_s28, 128  }
 0x1ba   : > { %1121 = vsyncadd (%p1003_p3), %s911_s28, 4294967168  ;;  %p17_p5 = scmp.ge.s32.totalorder %s1187_s18, 4   ;;  %s1608_s12 = smov %s1128_s13 }
 0x1bb   : > { %s1609_s13 = smov %s1132_s14  ;;  %s1610_s14 = smov %s1198_s21 }
 0x1bc   : > { %s1611_s15 = smov %s1187_s18  ;;  %19 = sbr.rel (!%p17_p5) target bundleno = 5 (0x5), region = 80 }
 0x1c1   :  { %916 = vsyncpa [#allocation3], 1 }
 0x1c2   :  { %918 = vsyncpa [#allocation3 + $0x1], 1 }
 0x1c3   :  { %919 = vsyncpa [#allocation5], 1 }
 0x1c4   :  { %921 = vsyncpa [#allocation5 + $0x1], 1 }

</bundles_post_ra>
